<compile_context>
chip_gen: v7x
topology: tpu7x:2x2x1
jax: 0.10.0
libtpu: 0.0.40
codegen_flags: <defaults>
</compile_context>

<pallas_src>
import functools

import jax
import jax.numpy as jnp
from jax.experimental import pallas as pl
from jax.experimental.pallas import tpu as pltpu


def _partial_dice_kernel(x_ref, t_ref, out_i_ref, out_d_ref,
                         acc_i_ref, acc_d_ref, *,
                         num_classes, row_tile, true_elems, approx_sigmoid):
    c = pl.program_id(0)                 # core-split index ("parallel")
    s = pl.program_id(1)                 # sequential spatial index ("arbitrary")
    n_s = pl.num_programs(1)
    gb = c * n_s + s                     # nominal global spatial-block index
    blk = row_tile * 128                 # flattened elements per block

    @pl.when(s == 0)
    def _init():
        acc_i_ref[...] = jnp.zeros_like(acc_i_ref)
        acc_d_ref[...] = jnp.zeros_like(acc_d_ref)

    x = x_ref[...].astype(jnp.float32)   # (C, tb, 128) logits, batch 0
    t = t_ref[...].astype(jnp.float32)   # (C, tb, 128) target, batch 0
    e = jnp.exp(-x)                      # EUP
    if approx_sigmoid:
        p = pl.reciprocal(1.0 + e, approx=True)   # divide rides the EUP slot
    else:
        p = 1.0 / (1.0 + e)

    def _accumulate(pt, pd):
        # Fold (C, tb, 128) -> (C, 8, 128): pure VPU vreg adds, no cross-lane work.
        acc_i_ref[...] += jnp.sum(
            pt.reshape(num_classes, row_tile // 8, 8, 128), axis=1)
        acc_d_ref[...] += jnp.sum(
            pd.reshape(num_classes, row_tile // 8, 8, 128), axis=1)

    # Interior blocks: every element is a real spatial element with index >= 1.
    is_interior = jnp.logical_and(gb > 0, (gb + 1) * blk <= true_elems)

    @pl.when(is_interior)
    def _fast():
        _accumulate(p * t, p + t)

    @pl.when(jnp.logical_not(is_interior))
    def _edge():
        # One (tb, 128) mask handles: the [:, 1:] skip of element 0, the padded /
        # out-of-bounds tail of a partial block, and fully-phantom blocks of the
        # second core split.  jnp.where (select) neutralizes garbage/NaN data.
        rr = jax.lax.broadcasted_iota(jnp.int32, (row_tile, 128), 0)
        ll = jax.lax.broadcasted_iota(jnp.int32, (row_tile, 128), 1)
        flat = gb * blk + rr * 128 + ll
        valid = jnp.logical_and(flat >= 1, flat < true_elems)[None]
        _accumulate(jnp.where(valid, p * t, 0.0),
                    jnp.where(valid, p + t, 0.0))

    @pl.when(s == n_s - 1)
    def _finish():
        # Per-core partials, lane-resolved: final 128-lane sum happens in the wrapper.
        out_i_ref[0] = jnp.sum(acc_i_ref[...], axis=1)
        out_d_ref[0] = jnp.sum(acc_d_ref[...], axis=1)


def ohem_dice_loss(pred, target, *, ohem_ratio=0.7, ohem_eps=1e-7,
                   dice_eps=1e-5, spatial_tile=None, approx_sigmoid=False):
    """Pallas TPU forward of OhemDiceLoss (module defaults)."""
    assert pred.shape == target.shape, "'input' and 'target' must have the same shape"
    N, C, D, H, W = pred.shape
    # compute_per_channel_dice hard-codes reshape(input[0], [4, -1])
    assert C == 4, "reference reshape([4, -1]) requires 4 channels"
    S = D * H * W

    # Sublane granule: 8 for 32-bit inputs, 16 if any input is 16-bit (bf16 tile).
    granule = 8 if (pred.dtype.itemsize == 4 and target.dtype.itemsize == 4) else 16
    rows = pl.cdiv(S, 128)
    rows_p = max(rows, granule)

    if S == rows_p * 128:
        # Free (metadata-only) reshape of the whole contiguous arrays; the
        # index_map below only ever selects batch 0, so batch>=1 is never DMAed.
        x_in = pred.reshape(N, C, rows_p, 128)
        t_in = target.reshape(N, C, rows_p, 128)
    else:
        # Rare fallback (S not a multiple of 128, or a tiny volume): copy batch 0
        # only and pad just up to the 128-lane / minimum-tile boundary.
        pad = rows_p * 128 - S
        x_in = jnp.pad(pred[0].reshape(C, S),
                       ((0, 0), (0, pad))).reshape(1, C, rows_p, 128)
        t_in = jnp.pad(target[0].reshape(C, S),
                       ((0, 0), (0, pad))).reshape(1, C, rows_p, 128)

    # Per-generation tile / scoped-VMEM sizing (v7x: 64 MiB, v5e/v6e: 128 MiB).
    try:
        vmem_cap = pltpu.get_tpu_info().vmem_capacity_bytes
    except Exception:
        vmem_cap = 64 << 20
    if vmem_cap >= (96 << 20):
        tb_cap, vmem_limit = 2048, 96 << 20          # v5e / v6e
    else:
        tb_cap, vmem_limit = 1024, 48 << 20          # v7x (64 MiB physical)
    if spatial_tile is not None:
        assert spatial_tile % (granule * 128) == 0
        tb_cap = spatial_tile // 128

    tb = max(granule, min(tb_cap, (rows_p // granule) * granule))
    grid_n = pl.cdiv(rows_p, tb)      # number of real spatial blocks
    half = pl.cdiv(grid_n, 2)         # blocks handled by each core split
    last_block = grid_n - 1

    def in_map(c, s):
        # Clamp phantom blocks of the second core split onto the last real block;
        # the kernel's element-index mask zeroes their contribution.
        return (0, 0, jnp.minimum(c * half + s, last_block), 0)

    kernel = functools.partial(
        _partial_dice_kernel, num_classes=C, row_tile=tb, true_elems=S,
        approx_sigmoid=approx_sigmoid)

    in_bytes = C * S * (pred.dtype.itemsize + target.dtype.itemsize)
    cost = pl.CostEstimate(flops=6 * C * S, transcendentals=2 * C * S,
                           bytes_accessed=in_bytes + 2 * 2 * C * 128 * 4)

    part_i, part_d = pl.pallas_call(
        kernel,
        out_shape=(jax.ShapeDtypeStruct((2, C, 128), jnp.float32),
                   jax.ShapeDtypeStruct((2, C, 128), jnp.float32)),
        grid=(2, half),
        in_specs=[pl.BlockSpec((None, C, tb, 128), in_map),
                  pl.BlockSpec((None, C, tb, 128), in_map)],
        out_specs=(pl.BlockSpec((1, C, 128), lambda c, s: (c, 0, 0)),
                   pl.BlockSpec((1, C, 128), lambda c, s: (c, 0, 0))),
        scratch_shapes=[pltpu.VMEM((C, 8, 128), jnp.float32),   # intersect acc
                        pltpu.VMEM((C, 8, 128), jnp.float32)],  # denominator acc
        compiler_params=pltpu.CompilerParams(
            dimension_semantics=("parallel", "arbitrary"),
            vmem_limit_bytes=vmem_limit),
        cost_estimate=cost,
    )(x_in, t_in)

    # Tiny epilogue in plain JAX: combine core partials, dice, mean, OHEM scale.
    intersect = part_i.sum(axis=(0, 2))            # (C,)
    denominator = part_d.sum(axis=(0, 2))          # (C,)
    dice = 2.0 * intersect / jnp.maximum(denominator, jnp.float32(dice_eps))
    dice_loss = jnp.mean(1.0 - dice)
    # OHEM on a 0-dim loss: mask is trivially all-ones -> scale by 1/(1+eps).
    # TODO(synk): confirm intended OHEM behaviour for a scalar dice loss
    # (literal torch topk(k=0) would raise).
    del ohem_ratio
    return dice_loss / (1.0 + float(ohem_eps))


def _reference_loss(pred, target, *, dice_eps=1e-5, ohem_eps=1e-7):
    """Pure-JAX transliteration of the PyTorch forward (for validation)."""
    p = jax.nn.sigmoid(pred.astype(jnp.float32))
    seg_pred = p[0].reshape(4, -1)[:, 1:]
    seg_true = target[0].reshape(4, -1)[:, 1:].astype(jnp.float32)
    intersect = (seg_pred * seg_true).sum(-1)
    denominator = (seg_pred + seg_true).sum(-1)
    per_channel_dice = 2.0 * intersect / jnp.maximum(denominator, dice_eps)
    dice_loss = jnp.mean(1.0 - per_channel_dice)
    return dice_loss / (1.0 + ohem_eps)


if __name__ == "__main__":
    N, C, D, H, W = 2, 4, 8, 16, 20   # S = 2560 = 20*128 -> free-reshape path

    key = jax.random.PRNGKey(0)
    k1, k2 = jax.random.split(key)
    pred = jax.random.normal(k1, (N, C, D, H, W), jnp.float32)
    labels = jax.random.randint(k2, (N, D, H, W), 0, C, dtype=jnp.int32)
    target = jax.nn.one_hot(labels, C, axis=1, dtype=jnp.float32)  # (N, C, D, H, W)

    ref = _reference_loss(pred, target)

    # 1) default tiling (one big block per core split), exact sigmoid
    loss = jax.block_until_ready(ohem_dice_loss(pred, target))
    assert jnp.allclose(loss, ref, rtol=1e-4, atol=1e-5), (loss, ref)

    # 2) small tile -> multi-block path: interior fast path + masked edge block
    #    + phantom block on the second core split
    loss2 = jax.block_until_ready(ohem_dice_loss(pred, target, spatial_tile=1024))
    assert jnp.allclose(loss2, ref, rtol=1e-4, atol=1e-5), (loss2, ref)

    # 3) approximate (EUP) reciprocal sigmoid path (v7x VALU trim); looser tol
    loss3 = jax.block_until_ready(ohem_dice_loss(pred, target, approx_sigmoid=True))
    assert jnp.allclose(loss3, ref, rtol=5e-3, atol=1e-4), (loss3, ref)

    print("KERNEL_OK")
</pallas_src>

<mosaic_0001>
module attributes {stable_mosaic.version = 11 : i64} {
  func.func @_partial_dice_kernel(%arg0: i32, %arg1: i32, %arg2: memref<1x4x16x128xf32, #tpu.memory_space<vmem>>, %arg3: memref<1x4x16x128xf32, #tpu.memory_space<vmem>>, %arg4: memref<1x4x128xf32, #tpu.memory_space<vmem>>, %arg5: memref<1x4x128xf32, #tpu.memory_space<vmem>>, %arg6: memref<4x8x128xf32, #tpu.memory_space<vmem>>, %arg7: memref<4x8x128xf32, #tpu.memory_space<vmem>>) attributes {dimension_semantics = [#tpu.dimension_semantics<parallel>, #tpu.dimension_semantics<arbitrary>], iteration_bounds = array<i64: 2, 1>, scalar_prefetch = 0 : i64, scratch_operands = 2 : i64, tpu.core_type = #tpu.core_type<tc>, window_params = [{transform_indices = @transform_0, window_bounds = array<i64: 1, 4, 16, 128>}, {transform_indices = @transform_1, window_bounds = array<i64: 1, 4, 16, 128>}, {transform_indices = @transform_2, window_bounds = array<i64: 1, 4, 128>}, {transform_indices = @transform_3, window_bounds = array<i64: 1, 4, 128>}]} {
    %c1_i32 = arith.constant 1 : i32
    %0 = arith.muli %arg0, %c1_i32 : i32
    %1 = arith.addi %0, %arg1 : i32
    %c0_i32 = arith.constant 0 : i32
    %2 = arith.cmpi eq, %arg1, %c0_i32 : i32
    %3 = arith.extui %2 : i1 to i32
    %c0_i32_0 = arith.constant 0 : i32
    %4 = arith.cmpi ne, %3, %c0_i32_0 : i32
    scf.if %4 {
      %cst_16 = arith.constant 0.000000e+00 : f32
      %29 = vector.broadcast %cst_16 : f32 to vector<4x8x128xf32>
      %c0_17 = arith.constant 0 : index
      %c0_18 = arith.constant 0 : index
      %c0_19 = arith.constant 0 : index
      %30 = vector.load %arg6[%c0_17, %c0_18, %c0_19] : memref<4x8x128xf32, #tpu.memory_space<vmem>>, vector<4x8x128xf32>
      tpu.vector_store %arg6[%c0_17, %c0_18, %c0_19], %29 {strides = array<i32>} : memref<4x8x128xf32, #tpu.memory_space<vmem>>, vector<4x8x128xf32>,
      %cst_20 = arith.constant 0.000000e+00 : f32
      %31 = vector.broadcast %cst_20 : f32 to vector<4x8x128xf32>
      %c0_21 = arith.constant 0 : index
      %c0_22 = arith.constant 0 : index
      %c0_23 = arith.constant 0 : index
      %32 = vector.load %arg7[%c0_21, %c0_22, %c0_23] : memref<4x8x128xf32, #tpu.memory_space<vmem>>, vector<4x8x128xf32>
      tpu.vector_store %arg7[%c0_21, %c0_22, %c0_23], %31 {strides = array<i32>} : memref<4x8x128xf32, #tpu.memory_space<vmem>>, vector<4x8x128xf32>,
    } else {
    }
    %c0 = arith.constant 0 : index
    %c0_1 = arith.constant 0 : index
    %c0_2 = arith.constant 0 : index
    %c0_3 = arith.constant 0 : index
    %5 = vector.load %arg2[%c0, %c0_1, %c0_2, %c0_3] : memref<1x4x16x128xf32, #tpu.memory_space<vmem>>, vector<1x4x16x128xf32>
    %6 = vector.shape_cast %5 : vector<1x4x16x128xf32> to vector<4x16x128xf32>
    %c0_4 = arith.constant 0 : index
    %c0_5 = arith.constant 0 : index
    %c0_6 = arith.constant 0 : index
    %c0_7 = arith.constant 0 : index
    %7 = vector.load %arg3[%c0_4, %c0_5, %c0_6, %c0_7] : memref<1x4x16x128xf32, #tpu.memory_space<vmem>>, vector<1x4x16x128xf32>
    %8 = vector.shape_cast %7 : vector<1x4x16x128xf32> to vector<4x16x128xf32>
    %cst = arith.constant 0.000000e+00 : f32
    %9 = vector.broadcast %cst : f32 to vector<4x16x128xf32>
    %10 = arith.subf %9, %6 : vector<4x16x128xf32>
    %11 = math.exp %10 : vector<4x16x128xf32>
    %cst_8 = arith.constant 1.000000e+00 : f32
    %12 = vector.broadcast %cst_8 : f32 to vector<4x16x128xf32>
    %13 = arith.addf %12, %11 : vector<4x16x128xf32>
    %cst_9 = arith.constant 1.000000e+00 : f32
    %14 = vector.broadcast %cst_9 : f32 to vector<4x16x128xf32>
    %15 = arith.divf %14, %13 : vector<4x16x128xf32>
    %c0_i32_10 = arith.constant 0 : i32
    %16 = arith.cmpi sgt, %1, %c0_i32_10 : i32
    %c1_i32_11 = arith.constant 1 : i32
    %17 = arith.addi %1, %c1_i32_11 : i32
    %c2048_i32 = arith.constant 2048 : i32
    %18 = arith.muli %17, %c2048_i32 : i32
    %c2560_i32 = arith.constant 2560 : i32
    %19 = arith.cmpi sle, %18, %c2560_i32 : i32
    %20 = arith.andi %16, %19 : i1
    %21 = arith.extui %20 : i1 to i32
    %c0_i32_12 = arith.constant 0 : i32
    %22 = arith.cmpi ne, %21, %c0_i32_12 : i32
    scf.if %22 {
      %29 = arith.mulf %15, %8 : vector<4x16x128xf32>
      %30 = arith.addf %15, %8 : vector<4x16x128xf32>
      %c0_16 = arith.constant 0 : index
      %c0_17 = arith.constant 0 : index
      %c0_18 = arith.constant 0 : index
      %31 = vector.load %arg6[%c0_16, %c0_17, %c0_18] : memref<4x8x128xf32, #tpu.memory_space<vmem>>, vector<4x8x128xf32>
      %32 = vector.shape_cast %29 : vector<4x16x128xf32> to vector<4x2x8x128xf32>
      %cst_19 = arith.constant dense<0.000000e+00> : vector<4x8x128xf32>
      %33 = vector.multi_reduction <add>, %32, %cst_19 [1] : vector<4x2x8x128xf32> to vector<4x8x128xf32>
      %34 = arith.addf %31, %33 : vector<4x8x128xf32>
      %c0_20 = arith.constant 0 : index
      %c0_21 = arith.constant 0 : index
      %c0_22 = arith.constant 0 : index
      %35 = vector.load %arg6[%c0_20, %c0_21, %c0_22] : memref<4x8x128xf32, #tpu.memory_space<vmem>>, vector<4x8x128xf32>
      tpu.vector_store %arg6[%c0_20, %c0_21, %c0_22], %34 {strides = array<i32>} : memref<4x8x128xf32, #tpu.memory_space<vmem>>, vector<4x8x128xf32>,
      %c0_23 = arith.constant 0 : index
      %c0_24 = arith.constant 0 : index
      %c0_25 = arith.constant 0 : index
      %36 = vector.load %arg7[%c0_23, %c0_24, %c0_25] : memref<4x8x128xf32, #tpu.memory_space<vmem>>, vector<4x8x128xf32>
      %37 = vector.shape_cast %30 : vector<4x16x128xf32> to vector<4x2x8x128xf32>
      %cst_26 = arith.constant dense<0.000000e+00> : vector<4x8x128xf32>
      %38 = vector.multi_reduction <add>, %37, %cst_26 [1] : vector<4x2x8x128xf32> to vector<4x8x128xf32>
      %39 = arith.addf %36, %38 : vector<4x8x128xf32>
      %c0_27 = arith.constant 0 : index
      %c0_28 = arith.constant 0 : index
      %c0_29 = arith.constant 0 : index
      %40 = vector.load %arg7[%c0_27, %c0_28, %c0_29] : memref<4x8x128xf32, #tpu.memory_space<vmem>>, vector<4x8x128xf32>
      tpu.vector_store %arg7[%c0_27, %c0_28, %c0_29], %39 {strides = array<i32>} : memref<4x8x128xf32, #tpu.memory_space<vmem>>, vector<4x8x128xf32>,
    } else {
    }
    %true = arith.constant true
    %23 = arith.xori %20, %true : i1
    %24 = arith.extui %23 : i1 to i32
    %c0_i32_13 = arith.constant 0 : i32
    %25 = arith.cmpi ne, %24, %c0_i32_13 : i32
    scf.if %25 {
      %29 = tpu.iota {dimensions = array<i32: 0>} : vector<16x128xi32>
      %30 = tpu.iota {dimensions = array<i32: 1>} : vector<16x128xi32>
      %c2048_i32_16 = arith.constant 2048 : i32
      %31 = arith.muli %1, %c2048_i32_16 : i32
      %c128_i32 = arith.constant 128 : i32
      %32 = vector.broadcast %c128_i32 : i32 to vector<16x128xi32>
      %33 = arith.muli %29, %32 : vector<16x128xi32>
      %34 = vector.broadcast %31 : i32 to vector<16x128xi32>
      %35 = arith.addi %34, %33 : vector<16x128xi32>
      %36 = arith.addi %35, %30 : vector<16x128xi32>
      %c1_i32_17 = arith.constant 1 : i32
      %37 = vector.broadcast %c1_i32_17 : i32 to vector<16x128xi32>
      %38 = arith.cmpi sge, %36, %37 : vector<16x128xi32>
      %c2560_i32_18 = arith.constant 2560 : i32
      %39 = vector.broadcast %c2560_i32_18 : i32 to vector<16x128xi32>
      %40 = arith.cmpi slt, %36, %39 : vector<16x128xi32>
      %41 = arith.andi %38, %40 : vector<16x128xi1>
      %42 = vector.shape_cast %41 : vector<16x128xi1> to vector<1x16x128xi1>
      %43 = arith.mulf %15, %8 : vector<4x16x128xf32>
      %cst_19 = arith.constant 0.000000e+00 : f32
      %44 = vector.shape_cast %42 : vector<1x16x128xi1> to vector<1x16x128xi1>
      %45 = vector.broadcast %44 : vector<1x16x128xi1> to vector<4x16x128xi1>
      %46 = vector.broadcast %cst_19 : f32 to vector<4x16x128xf32>
      %47 = arith.select %45, %43, %46 : vector<4x16x128xi1>, vector<4x16x128xf32>
      %48 = arith.addf %15, %8 : vector<4x16x128xf32>
      %cst_20 = arith.constant 0.000000e+00 : f32
      %49 = vector.shape_cast %42 : vector<1x16x128xi1> to vector<1x16x128xi1>
      %50 = vector.broadcast %49 : vector<1x16x128xi1> to vector<4x16x128xi1>
      %51 = vector.broadcast %cst_20 : f32 to vector<4x16x128xf32>
      %52 = arith.select %50, %48, %51 : vector<4x16x128xi1>, vector<4x16x128xf32>
      %c0_21 = arith.constant 0 : index
      %c0_22 = arith.constant 0 : index
      %c0_23 = arith.constant 0 : index
      %53 = vector.load %arg6[%c0_21, %c0_22, %c0_23] : memref<4x8x128xf32, #tpu.memory_space<vmem>>, vector<4x8x128xf32>
      %54 = vector.shape_cast %47 : vector<4x16x128xf32> to vector<4x2x8x128xf32>
      %cst_24 = arith.constant dense<0.000000e+00> : vector<4x8x128xf32>
      %55 = vector.multi_reduction <add>, %54, %cst_24 [1] : vector<4x2x8x128xf32> to vector<4x8x128xf32>
      %56 = arith.addf %53, %55 : vector<4x8x128xf32>
      %c0_25 = arith.constant 0 : index
      %c0_26 = arith.constant 0 : index
      %c0_27 = arith.constant 0 : index
      %57 = vector.load %arg6[%c0_25, %c0_26, %c0_27] : memref<4x8x128xf32, #tpu.memory_space<vmem>>, vector<4x8x128xf32>
      tpu.vector_store %arg6[%c0_25, %c0_26, %c0_27], %56 {strides = array<i32>} : memref<4x8x128xf32, #tpu.memory_space<vmem>>, vector<4x8x128xf32>,
      %c0_28 = arith.constant 0 : index
      %c0_29 = arith.constant 0 : index
      %c0_30 = arith.constant 0 : index
      %58 = vector.load %arg7[%c0_28, %c0_29, %c0_30] : memref<4x8x128xf32, #tpu.memory_space<vmem>>, vector<4x8x128xf32>
      %59 = vector.shape_cast %52 : vector<4x16x128xf32> to vector<4x2x8x128xf32>
      %cst_31 = arith.constant dense<0.000000e+00> : vector<4x8x128xf32>
      %60 = vector.multi_reduction <add>, %59, %cst_31 [1] : vector<4x2x8x128xf32> to vector<4x8x128xf32>
      %61 = arith.addf %58, %60 : vector<4x8x128xf32>
      %c0_32 = arith.constant 0 : index
      %c0_33 = arith.constant 0 : index
      %c0_34 = arith.constant 0 : index
      %62 = vector.load %arg7[%c0_32, %c0_33, %c0_34] : memref<4x8x128xf32, #tpu.memory_space<vmem>>, vector<4x8x128xf32>
      tpu.vector_store %arg7[%c0_32, %c0_33, %c0_34], %61 {strides = array<i32>} : memref<4x8x128xf32, #tpu.memory_space<vmem>>, vector<4x8x128xf32>,
    } else {
    }
    %c0_i32_14 = arith.constant 0 : i32
    %26 = arith.cmpi eq, %arg1, %c0_i32_14 : i32
    %27 = arith.extui %26 : i1 to i32
    %c0_i32_15 = arith.constant 0 : i32
    %28 = arith.cmpi ne, %27, %c0_i32_15 : i32
    scf.if %28 {
      %c0_16 = arith.constant 0 : index
      %c0_17 = arith.constant 0 : index
      %c0_18 = arith.constant 0 : index
      %29 = vector.load %arg6[%c0_16, %c0_17, %c0_18] : memref<4x8x128xf32, #tpu.memory_space<vmem>>, vector<4x8x128xf32>
      %cst_19 = arith.constant dense<0.000000e+00> : vector<4x128xf32>
      %30 = vector.multi_reduction <add>, %29, %cst_19 [1] : vector<4x8x128xf32> to vector<4x128xf32>
      %c0_20 = arith.constant 0 : index
      %c0_21 = arith.constant 0 : index
      %c0_22 = arith.constant 0 : index
      %31 = vector.load %arg4[%c0_20, %c0_21, %c0_22] : memref<1x4x128xf32, #tpu.memory_space<vmem>>, vector<1x4x128xf32>
      %32 = vector.shape_cast %31 : vector<1x4x128xf32> to vector<4x128xf32>
      %33 = vector.shape_cast %30 : vector<4x128xf32> to vector<1x4x128xf32>
      tpu.vector_store %arg4[%c0_20, %c0_21, %c0_22], %33 {strides = array<i32>} : memref<1x4x128xf32, #tpu.memory_space<vmem>>, vector<1x4x128xf32>,
      %c0_23 = arith.constant 0 : index
      %c0_24 = arith.constant 0 : index
      %c0_25 = arith.constant 0 : index
      %34 = vector.load %arg7[%c0_23, %c0_24, %c0_25] : memref<4x8x128xf32, #tpu.memory_space<vmem>>, vector<4x8x128xf32>
      %cst_26 = arith.constant dense<0.000000e+00> : vector<4x128xf32>
      %35 = vector.multi_reduction <add>, %34, %cst_26 [1] : vector<4x8x128xf32> to vector<4x128xf32>
      %c0_27 = arith.constant 0 : index
      %c0_28 = arith.constant 0 : index
      %c0_29 = arith.constant 0 : index
      %36 = vector.load %arg5[%c0_27, %c0_28, %c0_29] : memref<1x4x128xf32, #tpu.memory_space<vmem>>, vector<1x4x128xf32>
      %37 = vector.shape_cast %36 : vector<1x4x128xf32> to vector<4x128xf32>
      %38 = vector.shape_cast %35 : vector<4x128xf32> to vector<1x4x128xf32>
      tpu.vector_store %arg5[%c0_27, %c0_28, %c0_29], %38 {strides = array<i32>} : memref<1x4x128xf32, #tpu.memory_space<vmem>>, vector<1x4x128xf32>,
    } else {
    }
    return
  }
  func.func @transform_0(%arg0: i32, %arg1: i32) -> (i32, i32, i32, i32) {
    %c1_i32 = arith.constant 1 : i32
    %0 = arith.muli %arg0, %c1_i32 : i32
    %1 = arith.addi %0, %arg1 : i32
    %c1_i32_0 = arith.constant 1 : i32
    %2 = arith.minsi %1, %c1_i32_0 : i32
    %c0_i32 = arith.constant 0 : i32
    %c0_i32_1 = arith.constant 0 : i32
    %c0_i32_2 = arith.constant 0 : i32
    %c0_i32_3 = arith.constant 0 : i32
    return %c0_i32, %c0_i32_1, %2, %c0_i32_2 : i32, i32, i32, i32
  }
  func.func @transform_1(%arg0: i32, %arg1: i32) -> (i32, i32, i32, i32) {
    %c1_i32 = arith.constant 1 : i32
    %0 = arith.muli %arg0, %c1_i32 : i32
    %1 = arith.addi %0, %arg1 : i32
    %c1_i32_0 = arith.constant 1 : i32
    %2 = arith.minsi %1, %c1_i32_0 : i32
    %c0_i32 = arith.constant 0 : i32
    %c0_i32_1 = arith.constant 0 : i32
    %c0_i32_2 = arith.constant 0 : i32
    %c0_i32_3 = arith.constant 0 : i32
    return %c0_i32, %c0_i32_1, %2, %c0_i32_2 : i32, i32, i32, i32
  }
  func.func @transform_2(%arg0: i32, %arg1: i32) -> (i32, i32, i32) {
    %c0_i32 = arith.constant 0 : i32
    %c0_i32_0 = arith.constant 0 : i32
    %c0_i32_1 = arith.constant 0 : i32
    return %arg0, %c0_i32, %c0_i32_0 : i32, i32, i32
  }
  func.func @transform_3(%arg0: i32, %arg1: i32) -> (i32, i32, i32) {
    %c0_i32 = arith.constant 0 : i32
    %c0_i32_0 = arith.constant 0 : i32
    %c0_i32_1 = arith.constant 0 : i32
    return %arg0, %c0_i32, %c0_i32_0 : i32, i32, i32
  }
}

</mosaic_0001>

<bundles_post_ra>
// kernel: tpu_custom_call.1
= control target key start
LH: loop header
LB: loop body
LE: loop exit
PB: predicated region body
PF: predicated region fallthrough
CT: control target
= control target key end

     0   :  { %s2162_s0 = inlined_call_operand.vmem [shape: f32[2,4,20,128], index: 0, kind: input, shape index: {}]   ;;  %s2163_s1 = inlined_call_operand.vmem [shape: f32[2,4,20,128], index: 1, kind: input, shape index: {}]   ;;  %s2164_s2 = inlined_call_operand.hbm [shape: f32[2,4,128], index: 2, kind: output, shape index: {0}]   ;;  %s2165_s3 = inlined_call_operand.hbm [shape: f32[2,4,128], index: 3, kind: output, shape index: {1}]  }
   0x1   :  { %2166 = sst [smem:[#allocation12_spill]] %s2162_s0 }
   0x2   :  { %9 = vsyncpa [#allocation7], 0 }
   0x3   :  { %11 = vsyncpa [#allocation7 + $0x1], 0 }
   0x4   :  { %12 = vsyncpa [#allocation9], 0 }
   0x5   :  { %14 = vsyncpa [#allocation9 + $0x1], 0  ;;  %s1669_s12 = smov 0   ;;  %s1671_s13 = smov 0  }
   0x6   :  { %s1673_s14 = smov 0   ;;  %s1675_s15 = smov 0  }
   0x7   :  { %s1677_s16 = smov 0   ;;  %s1679_s17 = smov 0  }
   0x8   :  { %s1681_s18 = smov 0   ;;  %s1683_s19 = smov 0  }
   0x9 LB: > { %s1098_s20 = sadd.s32 4294967295, %s1580_s19   ;;  %s1099_s21 = sadd.s32 4294967294, %s1580_s19   ;;  %s1580_s19 = sphi %s1683_s19, %s20_s19   ;;  %s1576_s18 = sphi %s1681_s18, %s2192_s18   ;;  %s1572_s17 = sphi %s1679_s17, %s2191_s17   ;;  %s1568_s16 = sphi %s1677_s16, %s2190_s16   ;;  %s1564_s15 = sphi %s1675_s15, %s2189_s15   ;;  %s1560_s14 = sphi %s1673_s14, %s2188_s14   ;;  %s1556_s13 = sphi %s1671_s13, %s2187_s13   ;;  %s1552_s12 = sphi %s1669_s12, %s2186_s12  }
   0xa   : > { %s32_s22 = sadd.s32 1, %s1576_s18  ;;  %p37_p0 = scmp.lt.s32.totalorder %s1576_s18, 1 }
   0xb   : > { %p34_p1 = scmp.ge.s32.totalorder %s32_s22, 2  ;;  %s45_s23 = sadd.s32 1, %s1568_s16 }
   0xc   : > { %s1715_s24 = scalar_select %p37_p0, %s1576_s18, 1 }
   0xd   : > { %s2194_s22 = smov (%p34_p1, %s32_s22), 0  ;;  %p52_p2 = scmp.ne.s32.totalorder %s1568_s16, %s1564_s15 }
   0xe   : > { %p53_p3 = scmp.eq.s32.totalorder %s1580_s19, 0  ;;  %p40_p4 = scmp.lt.s32.totalorder %s2194_s22, 1 }
   0xf   : > { %s100_s25 = ssub.s32 %s1576_s18, %s2194_s22  ;;  %s103_s28 = sadd.s32 1, %s1560_s14 }
  0x10   : > { %p1725_p5 = por %p53_p3, %p52_p2  ;;  %p101_p6 = scmp.eq.s32.totalorder %s100_s25, 0 }
  0x11   : > { %s41_s27 = scalar_select %p40_p4, %s2194_s22, 1 }
  0x12   : > { %p113_p7 = scmp.ne.s32.totalorder %s1560_s14, %s1556_s13  ;;  %p114_p8 = scmp.eq.s32.totalorder %s1098_s20, 1 }
  0x13   : > { %s42_s29 = ssub.s32 %s1715_s24, %s41_s27  ;;  %p119_p10 = scmp.ne.s32.totalorder %s1556_s13, %s1552_s12 }
  0x14   : > { %p43_p9 = scmp.eq.s32.totalorder %s42_s29, 0  ;;  %p1742_p11 = por %p114_p8, %p113_p7 }
  0x15   : > { %s1737_s30 = scalar_select %p101_p6, %s1560_s14, %s103_s28  }
  0x16   : > { %s1740_s4 = scalar_select %p43_p9, %s1568_s16, %s45_s23  }
  0x17   : > { %p120_p12 = scmp.eq.s32.totalorder %s1099_s21, 1  ;;  %p1101_p0 = scmp.ge.s32.totalorder %s1580_s19, 2 }
  0x19   : > { %p1746_p13 = por %p120_p12, %p119_p10  ;;  %162 = sbr.rel (%p1101_p0) target bundleno = 144 (0x90), region = 16 }
  0x20   : > { %165 = sbr.rel (!%p1725_p5) target bundleno = 88 (0x58), region = 20  ;;  %s167_s7 = sand.u32 (%p1725_p5), 1, %s1568_s16  }
  0x21   : > { %s1103_s8 = sshll.u32 (%p1725_p5), %s1715_s24, 1  ;;  %s1102_s9 = sshll.u32 (%p1725_p5), %s167_s7, 6 }
  0x22   : > { %s174_s10 = ssub.s32 (%p1725_p5), 3, %s1103_s8  ;;  %s1145_s11 = sshll.u32 (%p1725_p5), %s1715_s24, 4 }
  0x23   : > { %p175_p1 = scmp.lt.s32.totalorder (%p1725_p5), %s174_s10, 2  ;;  %s2170_s0 = sld [smem:[#allocation12_spill]] (%p1725_p5) }
  0x24   : > { %s1766_s27 = scalar_lea.vmem (%p1725_p5), [#allocation4], %s1102_s9  }
  0x27   : > { %s2196_s10 = smov (!%p175_p1, %s174_s10), 2 }
  0x28   : > { %s1104_s25 = sshll.u32 %s2196_s10, 9 }
  0x29   : > { %s1763_s23 = scalar_lea.vmem %s2170_s0, %s1145_s11   ;;  %p1107_p2 = scmp.eq.s32.totalorder %s1104_s25, 0 }
  0x2a   : > { %s1769_s28 = sshrl.u32 (!%p1107_p2), %s2196_s10, 1 }
  0x2b   : > { %183 = sbr.rel (%p1107_p2) target bundleno = 88 (0x58), region = 24  ;;  %p1108_p3 = scmp.le.s32.totalorder (!%p1107_p2), %s1769_s28, 0 }
  0x32   : > { %1003 = sbr.rel (%p1108_p3) target bundleno = 67 (0x43), region = 223  ;;  %s2171_s29 = smov (!%p1108_p3), %s1766_s27 }
  0x33   : > { %s2172_s7 = smov (!%p1108_p3), %s1763_s23  ;;  %s1778_s8 = smov (!%p1108_p3), 0  }
  0x34   : > { %s1780_s11 = smov (!%p1108_p3), 0  }
  0x39 LB: >> { %v265_v0 = vld [vmem:[%s1588_s7] sm:$0xff]  ;;  %v267_v1 = vld [vmem:[%s1588_s7 + $0x8] sm:$0xff]  ;;  %v269_v2 = vld [vmem:[%s1588_s7 + $0x18] sm:$0xff]  ;;  %s281_s9 = sadd.s32 1, %s1592_s8  ;;  %s259_s11 = sadd.s32 1, %s1596_s11   ;;  %s1596_s11 = sphi %s1780_s11, %s259_s11   ;;  %s1592_s8 = sphi %s1778_s8, %s2173_s8   ;;  %s1588_s7 = sphi %s2172_s7, %s286_s7   ;;  %s1584_s29 = sphi %s2171_s29, %s287_s29  }
  0x3a   : >> { %266 = vst [vmem:[%s1584_s29] sm:$0xff] %v265_v0  ;;  %268 = vst [vmem:[%s1584_s29 + $0x8] sm:$0xff] %v267_v1  ;;  %v271_v3 = vld [vmem:[%s1588_s7 + $0x20] sm:$0xff]  ;;  %v273_v4 = vld [vmem:[%s1588_s7 + $0x30] sm:$0xff]  ;;  %p282_p4 = scmp.ge.s32.totalorder %s281_s9, %s1769_s28  ;;  %p258_p6 = scmp.ge.s32.totalorder %s259_s11, %s1769_s28 }
  0x3b   : >> { %270 = vst [vmem:[%s1584_s29 + $0x10] sm:$0xff] %v269_v2  ;;  %v275_v5 = vld [vmem:[%s1588_s7 + $0x38] sm:$0xff]  ;;  %272 = vst [vmem:[%s1584_s29 + $0x18] sm:$0xff] %v271_v3  ;;  %v277_v6 = vld [vmem:[%s1588_s7 + $0x48] sm:$0xff] }
  0x3c   : >> { %274 = vst [vmem:[%s1584_s29 + $0x20] sm:$0xff] %v273_v4  ;;  %276 = vst [vmem:[%s1584_s29 + $0x28] sm:$0xff] %v275_v5  ;;  %v279_v7 = vld [vmem:[%s1588_s7 + $0x50] sm:$0xff]  ;;  %s2198_s9 = smov (%p282_p4, %s281_s9), 0  ;;  %261 = sbr.rel (!%p258_p6) target bundleno = 57 (0x39), region = 229 }
  0x3d   : >> { %278 = vst [vmem:[%s1584_s29 + $0x30] sm:$0xff] %v277_v6  ;;  %280 = vst [vmem:[%s1584_s29 + $0x38] sm:$0xff] %v279_v7  ;;  %s1109_s20 = sshll.u32 %s2198_s9, 4  ;;  %s2173_s8 = smov %s2198_s9 }
  0x3e   : >> { %s286_s7 = scalar_lea.vmem %s1763_s23, %s1109_s20   ;;  %s287_s29 = scalar_lea.vmem %s1766_s27, %s1109_s20 [#allocation4]  }
  0x43 PF: > { %s1799_s21 = sand.u32 1, %s2196_s10   ;;  %s1146_s25 = sshll.u32 %s1769_s28, 4 }
  0x44   : > { %s1803_s20 = scalar_lea.vmem %s1763_s23, %s1146_s25   ;;  %s1806_s0 = scalar_lea.vmem %s1766_s27, %s1146_s25 [#allocation4]  }
  0x45   : > { %p1114_p7 = scmp.le.s32.totalorder %s1799_s21, 0 }
  0x46   : > { %s2174_s11 = smov (!%p1114_p7), %s1806_s0  ;;  %s2175_s29 = smov (!%p1114_p7), %s1803_s20 }
  0x47   : > { %1017 = sbr.rel (%p1114_p7) target bundleno = 88 (0x58), region = 234  ;;  %s1606_s7 = smov (!%p1114_p7), 0  }
  0x48   : > { %s1610_s8 = smov (!%p1114_p7), 0  }
  0x4e LB: >> { %v304_v8 = vld [vmem:[%s1604_s29] sm:$0xff]  ;;  %v306_v9 = vld [vmem:[%s1604_s29 + $0x18] sm:$0xff]  ;;  %v308_v10 = vld [vmem:[%s1604_s29 + $0x30] sm:$0xff]  ;;  %s312_s10 = sadd.s32 1, %s1608_s7  ;;  %s298_s8 = sadd.s32 1, %s1612_s8   ;;  %s1612_s8 = sphi %s1610_s8, %s298_s8   ;;  %s1608_s7 = sphi %s1606_s7, %s1607_s7   ;;  %s1604_s29 = sphi %s2175_s29, %s317_s29   ;;  %s1600_s11 = sphi %s2174_s11, %s318_s11  }
  0x4f   : >> { %305 = vst [vmem:[%s1600_s11] sm:$0xff] %v304_v8  ;;  %307 = vst [vmem:[%s1600_s11 + $0x10] sm:$0xff] %v306_v9  ;;  %v310_v11 = vld [vmem:[%s1604_s29 + $0x48] sm:$0xff]  ;;  %p313_p8 = scmp.ge.s32.totalorder %s312_s10, %s1799_s21  ;;  %p297_p9 = scmp.ge.s32.totalorder %s298_s8, %s1799_s21 }
  0x50   : >> { %309 = vst [vmem:[%s1600_s11 + $0x20] sm:$0xff] %v308_v10  ;;  %311 = vst [vmem:[%s1600_s11 + $0x30] sm:$0xff] %v310_v11 }
  0x51   : >> { %s2200_s10 = smov (%p313_p8, %s312_s10), 0  ;;  %300 = sbr.rel (!%p297_p9) target bundleno = 78 (0x4e), region = 240 }
  0x52   : >> { %s1115_s23 = sshll.u32 %s2200_s10, 3  ;;  %s1607_s7 = smov %s2200_s10  }
  0x53   : >> { %s317_s29 = scalar_lea.vmem %s1803_s20, %s1115_s23   ;;  %s318_s11 = scalar_lea.vmem %s1806_s0, %s1115_s23 [#allocation4]  }
  0x58 PF: > { %324 = sbr.rel (!%p1725_p5) target bundleno = 144 (0x90), region = 72  ;;  %s326_s27 = sand.u32 (%p1725_p5), 1, %s1568_s16  }
  0x59   : > { %s1118_s28 = sshll.u32 (%p1725_p5), %s1715_s24, 1  ;;  %s1117_s9 = sshll.u32 (%p1725_p5), %s326_s27, 6 }
  0x5a   : > { %s333_s25 = ssub.s32 (%p1725_p5), 3, %s1118_s28  ;;  %s1148_s7 = sshll.u32 (%p1725_p5), %s1715_s24, 4 }
  0x5b   : > { %p334_p10 = scmp.lt.s32.totalorder (%p1725_p5), %s333_s25, 2  ;;  %s1835_s0 = scalar_lea.vmem (%p1725_p5), %s2163_s1, %s1148_s7  }
  0x5c   : > { %s1838_s26 = scalar_lea.vmem (%p1725_p5), [#allocation5], %s1117_s9  }
  0x5f   : > { %s2202_s25 = smov (!%p334_p10, %s333_s25), 2 }
  0x60   : > { %s1119_s21 = sshll.u32 %s2202_s25, 9 }
  0x61   : > { %p1122_p5 = scmp.eq.s32.totalorder %s1119_s21, 0 }
  0x62   : > { %s1841_s20 = sshrl.u32 (!%p1122_p5), %s2202_s25, 1 }
  0x63   : > { %342 = sbr.rel (%p1122_p5) target bundleno = 144 (0x90), region = 76  ;;  %p1123_p12 = scmp.le.s32.totalorder (!%p1122_p5), %s1841_s20, 0 }
  0x6a   : > { %1031 = sbr.rel (%p1123_p12) target bundleno = 123 (0x7b), region = 245  ;;  %s2176_s24 = smov (!%p1123_p12), %s1838_s26 }
  0x6b   : > { %s2177_s11 = smov (!%p1123_p12), %s1835_s0  ;;  %s1850_s10 = smov (!%p1123_p12), 0  }
  0x6c   : > { %s1852_s23 = smov (!%p1123_p12), 0  }
  0x71 LB: >> { %v424_v12 = vld [vmem:[%s1620_s11] sm:$0xff]  ;;  %v426_v13 = vld [vmem:[%s1620_s11 + $0x8] sm:$0xff]  ;;  %v428_v14 = vld [vmem:[%s1620_s11 + $0x18] sm:$0xff]  ;;  %s440_s27 = sadd.s32 1, %s1624_s10  ;;  %s418_s23 = sadd.s32 1, %s1628_s23   ;;  %s1628_s23 = sphi %s1852_s23, %s418_s23   ;;  %s1624_s10 = sphi %s1850_s10, %s2178_s10   ;;  %s1620_s11 = sphi %s2177_s11, %s445_s11   ;;  %s1616_s24 = sphi %s2176_s24, %s446_s24  }
  0x72   : >> { %425 = vst [vmem:[%s1616_s24] sm:$0xff] %v424_v12  ;;  %427 = vst [vmem:[%s1616_s24 + $0x8] sm:$0xff] %v426_v13  ;;  %v430_v15 = vld [vmem:[%s1620_s11 + $0x20] sm:$0xff]  ;;  %v432_v16 = vld [vmem:[%s1620_s11 + $0x30] sm:$0xff]  ;;  %p441_p1 = scmp.ge.s32.totalorder %s440_s27, %s1841_s20  ;;  %p417_p2 = scmp.ge.s32.totalorder %s418_s23, %s1841_s20 }
  0x73   : >> { %429 = vst [vmem:[%s1616_s24 + $0x10] sm:$0xff] %v428_v14  ;;  %v434_v17 = vld [vmem:[%s1620_s11 + $0x38] sm:$0xff]  ;;  %431 = vst [vmem:[%s1616_s24 + $0x18] sm:$0xff] %v430_v15  ;;  %v436_v18 = vld [vmem:[%s1620_s11 + $0x48] sm:$0xff] }
  0x74   : >> { %433 = vst [vmem:[%s1616_s24 + $0x20] sm:$0xff] %v432_v16  ;;  %435 = vst [vmem:[%s1616_s24 + $0x28] sm:$0xff] %v434_v17  ;;  %v438_v19 = vld [vmem:[%s1620_s11 + $0x50] sm:$0xff]  ;;  %s2204_s27 = smov (%p441_p1, %s440_s27), 0  ;;  %420 = sbr.rel (!%p417_p2) target bundleno = 113 (0x71), region = 251 }
  0x75   : >> { %437 = vst [vmem:[%s1616_s24 + $0x30] sm:$0xff] %v436_v18  ;;  %439 = vst [vmem:[%s1616_s24 + $0x38] sm:$0xff] %v438_v19  ;;  %s1124_s28 = sshll.u32 %s2204_s27, 4  ;;  %s2178_s10 = smov %s2204_s27 }
  0x76   : >> { %s445_s11 = scalar_lea.vmem %s1835_s0, %s1124_s28   ;;  %s446_s24 = scalar_lea.vmem %s1838_s26, %s1124_s28 [#allocation5]  }
  0x7b PF: > { %s1871_s9 = sand.u32 1, %s2202_s25   ;;  %s1149_s7 = sshll.u32 %s1841_s20, 4 }
  0x7c   : > { %s1875_s29 = scalar_lea.vmem %s1835_s0, %s1149_s7   ;;  %s1878_s8 = scalar_lea.vmem %s1838_s26, %s1149_s7 [#allocation5]  }
  0x7d   : > { %p1129_p3 = scmp.le.s32.totalorder %s1871_s9, 0 }
  0x7e   : > { %s2179_s21 = smov (!%p1129_p3), %s1878_s8  ;;  %s2180_s24 = smov (!%p1129_p3), %s1875_s29 }
  0x7f   : > { %1045 = sbr.rel (%p1129_p3) target bundleno = 144 (0x90), region = 256  ;;  %s1638_s11 = smov (!%p1129_p3), 0  }
  0x80   : > { %s1642_s10 = smov (!%p1129_p3), 0  }
  0x86 LB: >> { %v463_v20 = vld [vmem:[%s1636_s24] sm:$0xff]  ;;  %v465_v21 = vld [vmem:[%s1636_s24 + $0x18] sm:$0xff]  ;;  %v467_v22 = vld [vmem:[%s1636_s24 + $0x30] sm:$0xff]  ;;  %s471_s25 = sadd.s32 1, %s1640_s11  ;;  %s457_s10 = sadd.s32 1, %s1644_s10   ;;  %s1644_s10 = sphi %s1642_s10, %s457_s10   ;;  %s1640_s11 = sphi %s1638_s11, %s1639_s11   ;;  %s1636_s24 = sphi %s2180_s24, %s476_s24   ;;  %s1632_s21 = sphi %s2179_s21, %s477_s21  }
  0x87   : >> { %464 = vst [vmem:[%s1632_s21] sm:$0xff] %v463_v20  ;;  %466 = vst [vmem:[%s1632_s21 + $0x10] sm:$0xff] %v465_v21  ;;  %v469_v23 = vld [vmem:[%s1636_s24 + $0x48] sm:$0xff]  ;;  %p472_p4 = scmp.ge.s32.totalorder %s471_s25, %s1871_s9  ;;  %p456_p6 = scmp.ge.s32.totalorder %s457_s10, %s1871_s9 }
  0x88   : >> { %468 = vst [vmem:[%s1632_s21 + $0x20] sm:$0xff] %v467_v22  ;;  %470 = vst [vmem:[%s1632_s21 + $0x30] sm:$0xff] %v469_v23 }
  0x89   : >> { %s2206_s25 = smov (%p472_p4, %s471_s25), 0  ;;  %459 = sbr.rel (!%p456_p6) target bundleno = 134 (0x86), region = 262 }
  0x8a   : >> { %s1130_s0 = sshll.u32 %s2206_s25, 3  ;;  %s1639_s11 = smov %s2206_s25  }
  0x8b   : >> { %s476_s24 = scalar_lea.vmem %s1875_s29, %s1130_s0   ;;  %s477_s21 = scalar_lea.vmem %s1878_s8, %s1130_s0 [#allocation5]  }
  0x90 PF: > { %p1132_p7 = scmp.ge.s32.totalorder %s1580_s19, 1  ;;  %p482_p8 = scmp.lt.s32.totalorder %s1580_s19, 3 }
  0x92   : > { %p483_p9 = pnand %p1132_p7, %p482_p8 }
  0x93   : > { %s489_s26 = sand.u32 (!%p483_p9), 1, %s1564_s15   ;;  %s1901_s20 = sand.u32 (!%p483_p9), 1, %s1556_s13   ;;  %v1646_v24 = vmov (!%p483_p9), 0.0  }
  0x94   : > { %486 = sbr.rel (%p483_p9) target bundleno = 277 (0x115), region = 124  ;;  %s1133_s23 = sshll.u32 (!%p483_p9), %s489_s26, 6  ;;  %549 = vst [vmem:[#allocation2] sm:$0xff] (!%p483_p9), %v1646_v24  ;;  %550 = vst [vmem:[#allocation2 + $0x8] sm:$0xff] (!%p483_p9), %v1646_v24 }
  0x95   : > { %s1135_s27 = sshll.u32 (!%p483_p9), %s1901_s20, 2  ;;  %551 = vst [vmem:[#allocation2 + $0x10] sm:$0xff] (!%p483_p9), %v1646_v24  ;;  %552 = vst [vmem:[#allocation2 + $0x18] sm:$0xff] (!%p483_p9), %v1646_v24  ;;  %s491_s28 = scalar_lea.vmem (!%p483_p9), [#allocation4], %s1133_s23 }
  0x96   : > { %553 = vst [vmem:[#allocation3] sm:$0xff] (!%p483_p9), %v1646_v24  ;;  %554 = vst [vmem:[#allocation3 + $0x8] sm:$0xff] (!%p483_p9), %v1646_v24  ;;  %v557_v25 = vld [vmem:[%s491_s28] sm:$0xff] (!%p483_p9)  ;;  %v558_v26 = vld [vmem:[%s491_s28 + $0x8] sm:$0xff] (!%p483_p9)  ;;  %s498_s15 = scalar_lea.vmem (!%p483_p9), [#allocation5], %s1133_s23  ;;  %p621_p10 = scmp.gt.s32.totalorder (!%p483_p9), %s1572_s17, 0 }
  0x97   : > { %555 = vst [vmem:[#allocation3 + $0x10] sm:$0xff] (!%p483_p9), %v1646_v24  ;;  %556 = vst [vmem:[#allocation3 + $0x18] sm:$0xff] (!%p483_p9), %v1646_v24  ;;  %v559_v27 = vld [vmem:[%s491_s28 + $0x10] sm:$0xff] (!%p483_p9)  ;;  %v560_v28 = vld [vmem:[%s491_s28 + $0x18] sm:$0xff] (!%p483_p9)  ;;  %v573_v31 = vsub.f32 (!%p483_p9), 0.0, %v557_v25  ;;  %v574_v32 = vsub.f32 (!%p483_p9), 0.0, %v558_v26 }
  0x98   : > { %v561_v29 = vld [vmem:[%s491_s28 + $0x20] sm:$0xff] (!%p483_p9)  ;;  %v562_v30 = vld [vmem:[%s491_s28 + $0x28] sm:$0xff] (!%p483_p9)  ;;  %v575_v33 = vsub.f32 (!%p483_p9), 0.0, %v559_v27  ;;  %v563_v34 = vld [vmem:[%s491_s28 + $0x30] sm:$0xff] (!%p483_p9)  ;;  %v576_v37 = vsub.f32 (!%p483_p9), 0.0, %v560_v28  ;;  %s1151_s9 = sshll.u32 (!%p483_p9), %s1572_s17, 11 }
  0x99   : > { %v564_v35 = vld [vmem:[%s491_s28 + $0x38] sm:$0xff] (!%p483_p9)  ;;  %v1904_v36 = vld [vmem:[%s498_s15] sm:$0xff] (!%p483_p9)  ;;  %v577_v38 = vsub.f32 (!%p483_p9), 0.0, %v561_v29  ;;  %v578_v39 = vsub.f32 (!%p483_p9), 0.0, %v562_v30  ;;  %v1906_v40 = vld [vmem:[%s498_s15 + $0x8] sm:$0xff] (!%p483_p9)  ;;  %v579_v43 = vsub.f32 (!%p483_p9), 0.0, %v563_v34 }
  0x9a   : > { %v1908_v41 = vld [vmem:[%s498_s15 + $0x10] sm:$0xff] (!%p483_p9)  ;;  %v1910_v42 = vld [vmem:[%s498_s15 + $0x18] sm:$0xff] (!%p483_p9)  ;;  %v580_v44 = vsub.f32 (!%p483_p9), 0.0, %v564_v35  ;;  %v1913_v45 = vld [vmem:[%s498_s15 + $0x20] sm:$0xff] (!%p483_p9)  ;;  %v581_v48 = vmul.f32 (!%p483_p9), 1.442695, %v573_v31 }
  0x9b   : > { %v1915_v46 = vld [vmem:[%s498_s15 + $0x28] sm:$0xff]  ;;  %v1917_v47 = vld [vmem:[%s498_s15 + $0x30] sm:$0xff]  ;;  %v1920_v49 = vld [vmem:[%s498_s15 + $0x38] sm:$0xff]  ;;  %v583_v50 = vmul.f32 1.442695, %v574_v32  ;;  %s1152_s7 = sadd.s32 2048, %s1151_s9 }
  0x9c   : > { %v585_v51 = vmul.f32 1.442695, %v575_v33  ;;  %1358 = vpow2.f32 %v581_v48  ;;  %v587_v52 = vmul.f32 1.442695, %v576_v37  ;;  %v589_v53 = vmul.f32 1.442695, %v577_v38 }
  0x9d   : > { %1360 = vpow2.f32 %v583_v50  ;;  %v591_v54 = vmul.f32 1.442695, %v578_v39  ;;  %p624_p5 = scmp.le.s32.totalorder %s1152_s7, 2560  ;;  %v593_v55 = vmul.f32 1.442695, %v579_v43  ;;  %s1948_s8 = scalar_lea.vmem [#allocation6], %s1135_s27 }
  0x9e   : > { %1362 = vpow2.f32 %v585_v51  ;;  %v595_v56 = vmul.f32 1.442695, %v580_v44  ;;  %s1952_s21 = scalar_lea.vmem [#allocation8], %s1135_s27 }
  0x9f   : > { %1364 = vpow2.f32 %v587_v52  ;;  %p1926_p12 = pnand %p624_p5, %p621_p10 }
  0xa0   : > { %1366 = vpow2.f32 %v589_v53  ;;  %v645_v21 = vld [vmem:[#allocation2] sm:$0xff] (!%p1926_p12)  ;;  %v646_v22 = vld [vmem:[#allocation2 + $0x8] sm:$0xff] (!%p1926_p12)  ;;  %v647_v29 = vld [vmem:[#allocation2 + $0x10] sm:$0xff] (!%p1926_p12) }
  0xa1   : > { %1368 = vpow2.f32 %v591_v54  ;;  %v648_v30 = vld [vmem:[#allocation2 + $0x18] sm:$0xff] (!%p1926_p12)  ;;  %v661_v35 = vld [vmem:[#allocation3] sm:$0xff] (!%p1926_p12)  ;;  %v662_v48 = vld [vmem:[#allocation3 + $0x8] sm:$0xff] (!%p1926_p12) }
  0xa2   : > { %1370 = vpow2.f32 %v593_v55 }
  0xa3   : > { %1372 = vpow2.f32 %v595_v56  ;;  %v663_v56 = vld [vmem:[#allocation3 + $0x10] sm:$0xff] (!%p1926_p12) }
  0xa6   : > { %v1359_v57 = vpop.eup %1358 }
  0xa7   : > { %v1361_v58 = vpop.eup %1360  ;;  %v597_v59 = vadd.f32 1.0, %v1359_v57 }
  0xa8   : > { %v1363_v60 = vpop.eup %1362  ;;  %v598_v61 = vadd.f32 1.0, %v1361_v58 }
  0xa9   : > { %v1365_v62 = vpop.eup %1364  ;;  %v599_v63 = vadd.f32 1.0, %v1363_v60  ;;  %1374 = vrcp.f32 %v597_v59 }
  0xaa   : > { %v1367_v0 = vpop.eup %1366  ;;  %v600_v1 = vadd.f32 1.0, %v1365_v62  ;;  %1376 = vrcp.f32 %v598_v61  ;;  %v664_v61 = vld [vmem:[#allocation3 + $0x18] sm:$0xff] (!%p1926_p12) }
  0xab   : > { %v1369_v2 = vpop.eup %1368  ;;  %v601_v3 = vadd.f32 1.0, %v1367_v0  ;;  %1378 = vrcp.f32 %v599_v63 }
  0xac   : > { %v1371_v4 = vpop.eup %1370  ;;  %v602_v5 = vadd.f32 1.0, %v1369_v2  ;;  %1380 = vrcp.f32 %v600_v1 }
  0xad   : > { %v1373_v6 = vpop.eup %1372  ;;  %v603_v7 = vadd.f32 1.0, %v1371_v4  ;;  %1382 = vrcp.f32 %v601_v3 }
  0xae   : > { %v604_v8 = vadd.f32 1.0, %v1373_v6  ;;  %1384 = vrcp.f32 %v602_v5 }
  0xaf   : > { %1386 = vrcp.f32 %v603_v7 }
  0xb0   : > { %1388 = vrcp.f32 %v604_v8 }
  0xb3   : > { %v1930_v9 = vpop.eup %1374 }
  0xb4   : > { %v1932_v10 = vpop.eup %1376  ;;  %628 = sbr.rel (%p1926_p12) target bundleno = 194 (0xc2), region = 140  ;;  %v629_v17 = vmul.f32 (!%p1926_p12), %v1930_v9, %v1904_v36  ;;  %v637_v31 = vadd.f32 (!%p1926_p12), %v1930_v9, %v1904_v36 }
  0xb5   : > { %v1934_v11 = vpop.eup %1378  ;;  %v630_v18 = vmul.f32 (!%p1926_p12), %v1932_v10, %v1906_v40  ;;  %v638_v32 = vadd.f32 (!%p1926_p12), %v1932_v10, %v1906_v40 }
  0xb6   : > { %v1936_v12 = vpop.eup %1380  ;;  %v631_v19 = vmul.f32 (!%p1926_p12), %v1934_v11, %v1908_v41  ;;  %v639_v37 = vadd.f32 (!%p1926_p12), %v1934_v11, %v1908_v41 }
  0xb7   : > { %v1938_v13 = vpop.eup %1382  ;;  %v632_v20 = vmul.f32 (!%p1926_p12), %v1936_v12, %v1910_v42  ;;  %v649_v27 = vadd.f32 (!%p1926_p12), %v630_v18, %v629_v17  ;;  %v640_v38 = vadd.f32 (!%p1926_p12), %v1936_v12, %v1910_v42  ;;  %v665_v44 = vadd.f32 (!%p1926_p12), %v638_v32, %v637_v31 }
  0xb8   : > { %v1940_v14 = vpop.eup %1384  ;;  %v633_v23 = vmul.f32 (!%p1926_p12), %v1938_v13, %v1913_v45  ;;  %v641_v50 = vadd.f32 (!%p1926_p12), %v1938_v13, %v1913_v45 }
  0xb9   : > { %v1942_v15 = vpop.eup %1386  ;;  %v634_v24 = vmul.f32 (!%p1926_p12), %v1940_v14, %v1915_v46  ;;  %v650_v28 = vadd.f32 (!%p1926_p12), %v632_v20, %v631_v19  ;;  %v653_v39 = vadd.f32 (!%p1926_p12), %v649_v27, %v645_v21  ;;  %v666_v53 = vadd.f32 (!%p1926_p12), %v640_v38, %v639_v37 }
  0xba   : > { %v1944_v16 = vpop.eup %1388  ;;  %v635_v25 = vmul.f32 (!%p1926_p12), %v1942_v15, %v1917_v47  ;;  %v642_v54 = vadd.f32 (!%p1926_p12), %v1940_v14, %v1915_v46  ;;  %v669_v55 = vadd.f32 (!%p1926_p12), %v665_v44, %v661_v35  ;;  %v643_v57 = vadd.f32 (!%p1926_p12), %v1942_v15, %v1917_v47 }
  0xbb   : > { %v636_v26 = vmul.f32 %v1944_v16, %v1920_v49  ;;  %v651_v33 = vadd.f32 %v634_v24, %v633_v23  ;;  %v654_v43 = vadd.f32 %v650_v28, %v646_v22  ;;  %657 = vst [vmem:[#allocation2] sm:$0xff] %v653_v39  ;;  %v644_v58 = vadd.f32 %v1944_v16, %v1920_v49 }
  0xbc   : > { %v670_v59 = vadd.f32 %v666_v53, %v662_v48  ;;  %v667_v60 = vadd.f32 %v642_v54, %v641_v50  ;;  %673 = vst [vmem:[#allocation3] sm:$0xff] %v669_v55 }
  0xbd   : > { %v652_v34 = vadd.f32 %v636_v26, %v635_v25  ;;  %v655_v51 = vadd.f32 %v651_v33, %v647_v29  ;;  %658 = vst [vmem:[#allocation2 + $0x8] sm:$0xff] %v654_v43  ;;  %v668_v62 = vadd.f32 %v644_v58, %v643_v57 }
  0xbe   : > { %674 = vst [vmem:[#allocation3 + $0x8] sm:$0xff] %v670_v59  ;;  %v671_v63 = vadd.f32 %v667_v60, %v663_v56 }
  0xbf   : > { %v656_v52 = vadd.f32 %v652_v34, %v648_v30  ;;  %659 = vst [vmem:[#allocation2 + $0x10] sm:$0xff] %v655_v51  ;;  %v672_v0 = vadd.f32 %v668_v62, %v664_v61 }
  0xc0   : > { %675 = vst [vmem:[#allocation3 + $0x10] sm:$0xff] %v671_v63 }
  0xc1   : > { %660 = vst [vmem:[#allocation2 + $0x18] sm:$0xff] %v656_v52  ;;  %676 = vst [vmem:[#allocation3 + $0x18] sm:$0xff] %v672_v0 }
  0xc2 PF: > { %679 = sbr.rel (!%p1926_p12) target bundleno = 220 (0xdc), region = 144  ;;  %v680_v1 = vlaneseq (%p1926_p12)  ;;  %v688_v3 = vstv (%p1926_p12), %s1151_s9  ;;  %v699_v17 = vmul.f32 (%p1926_p12), %v1930_v9, %v1904_v36  ;;  %v700_v18 = vmul.f32 (%p1926_p12), %v1932_v10, %v1906_v40 }
  0xc3   : > { %v701_v19 = vmul.f32 (%p1926_p12), %v1934_v11, %v1908_v41  ;;  %v702_v20 = vmul.f32 (%p1926_p12), %v1936_v12, %v1910_v42  ;;  %v703_v21 = vmul.f32 (%p1926_p12), %v1938_v13, %v1913_v45  ;;  %v704_v24 = vmul.f32 (%p1926_p12), %v1940_v14, %v1915_v46  ;;  %v751_v56 = vld [vmem:[#allocation3] sm:$0xff] (%p1926_p12) }
  0xc4   : > { %v681_v2 = vshrl.u32 (%p1926_p12), %v680_v1, 7  ;;  %v684_v5 = vand.u32 (%p1926_p12), 127, %v680_v1  ;;  %v705_v25 = vmul.f32 (%p1926_p12), %v1942_v15, %v1917_v47  ;;  %v706_v26 = vmul.f32 (%p1926_p12), %v1944_v16, %v1920_v49 }
  0xc5   : > { %v719_v27 = vadd.f32 (%p1926_p12), %v1930_v9, %v1904_v36  ;;  %v720_v28 = vadd.f32 (%p1926_p12), %v1932_v10, %v1906_v40  ;;  %v721_v29 = vadd.f32 (%p1926_p12), %v1934_v11, %v1908_v41  ;;  %v722_v31 = vadd.f32 (%p1926_p12), %v1936_v12, %v1910_v42  ;;  %v752_v57 = vld [vmem:[#allocation3 + $0x8] sm:$0xff] (%p1926_p12) }
  0xc6   : > { %v682_v4 = vadd.s32 (%p1926_p12), 8, %v681_v2  ;;  %v686_v6 = vmul.u32 (%p1926_p12), 128, %v681_v2  ;;  %v723_v33 = vadd.f32 (%p1926_p12), %v1938_v13, %v1913_v45  ;;  %v724_v36 = vadd.f32 (%p1926_p12), %v1940_v14, %v1915_v46  ;;  %v736_v46 = vld [vmem:[#allocation2 + $0x8] sm:$0xff] (%p1926_p12) }
  0xc7   : > { %v725_v40 = vadd.f32 (%p1926_p12), %v1942_v15, %v1917_v47  ;;  %v726_v41 = vadd.f32 (%p1926_p12), %v1944_v16, %v1920_v49  ;;  %v737_v16 = vld [vmem:[#allocation2 + $0x10] sm:$0xff] (%p1926_p12) }
  0xc8   : > { %v687_v7 = vmul.u32 (%p1926_p12), 128, %v682_v4  ;;  %v689_v8 = vadd.s32 (%p1926_p12), %v688_v3, %v686_v6  ;;  %v738_v35 = vld [vmem:[#allocation2 + $0x18] sm:$0xff] (%p1926_p12)  ;;  %v753_v58 = vld [vmem:[#allocation3 + $0x10] sm:$0xff] (%p1926_p12) }
  0xc9   : > { %v735_v45 = vld [vmem:[#allocation2] sm:$0xff]  ;;  %v754_v0 = vld [vmem:[#allocation3 + $0x18] sm:$0xff] }
  0xca   : > { %v690_v22 = vadd.s32 %v688_v3, %v687_v7  ;;  %v691_v23 = vadd.s32 %v689_v8, %v684_v5 }
  0xcc   : > { %v692_v30 = vadd.s32 %v690_v22, %v684_v5  ;;  %vm693_vm0 = vcmp.ge.s32.totalorder %v691_v23, 1  ;;  %vm695_vm1 = vcmp.lt.s32.totalorder %v691_v23, 2560 }
  0xcd   : > { %vm2016_vm2 = vmand %vm693_vm0, %vm695_vm1 }
  0xce   : > { %vm694_vm3 = vcmp.ge.s32.totalorder %v692_v30, 1  ;;  %vm696_vm4 = vcmp.lt.s32.totalorder %v692_v30, 2560  ;;  %v711_v42 = vsel %vm2016_vm2, %v699_v17, 0.0  ;;  %v713_v9 = vsel %vm2016_vm2, %v701_v19, 0.0 }
  0xcf   : > { %vm2032_vm5 = vmand %vm694_vm3, %vm696_vm4  ;;  %v715_v47 = vsel %vm2016_vm2, %v703_v21, 0.0  ;;  %v717_v49 = vsel %vm2016_vm2, %v705_v25, 0.0  ;;  %v727_v11 = vsel %vm2016_vm2, %v719_v27, 0.0  ;;  %v729_v12 = vsel %vm2016_vm2, %v721_v29, 0.0 }
  0xd0   : > { %v712_v13 = vsel %vm2032_vm5, %v700_v18, 0.0  ;;  %v714_v14 = vsel %vm2032_vm5, %v702_v20, 0.0  ;;  %v716_v15 = vsel %vm2032_vm5, %v704_v24, 0.0  ;;  %v718_v34 = vsel %vm2032_vm5, %v706_v26, 0.0 }
  0xd1   : > { %v739_v37 = vadd.f32 %v712_v13, %v711_v42  ;;  %v740_v38 = vadd.f32 %v714_v14, %v713_v9  ;;  %v741_v39 = vadd.f32 %v716_v15, %v715_v47  ;;  %v742_v43 = vadd.f32 %v718_v34, %v717_v49 }
  0xd2   : > { %v728_v44 = vsel %vm2032_vm5, %v720_v28, 0.0  ;;  %v730_v48 = vsel %vm2032_vm5, %v722_v31, 0.0  ;;  %v731_v50 = vsel %vm2016_vm2, %v723_v33, 0.0  ;;  %v732_v51 = vsel %vm2032_vm5, %v724_v36, 0.0 }
  0xd3   : > { %v743_v52 = vadd.f32 %v739_v37, %v735_v45  ;;  %v744_v53 = vadd.f32 %v740_v38, %v736_v46  ;;  %v745_v54 = vadd.f32 %v741_v39, %v737_v16  ;;  %v746_v55 = vadd.f32 %v742_v43, %v738_v35 }
  0xd4   : > { %v755_v59 = vadd.f32 %v728_v44, %v727_v11  ;;  %v756_v60 = vadd.f32 %v730_v48, %v729_v12  ;;  %v757_v61 = vadd.f32 %v732_v51, %v731_v50  ;;  %v733_v62 = vsel %vm2016_vm2, %v725_v40, 0.0 }
  0xd5   : > { %747 = vst [vmem:[#allocation2] sm:$0xff] %v743_v52  ;;  %748 = vst [vmem:[#allocation2 + $0x8] sm:$0xff] %v744_v53  ;;  %v734_v63 = vsel %vm2032_vm5, %v726_v41, 0.0 }
  0xd6   : > { %749 = vst [vmem:[#allocation2 + $0x10] sm:$0xff] %v745_v54  ;;  %750 = vst [vmem:[#allocation2 + $0x18] sm:$0xff] %v746_v55  ;;  %v759_v1 = vadd.f32 %v755_v59, %v751_v56  ;;  %v760_v2 = vadd.f32 %v756_v60, %v752_v57  ;;  %v761_v3 = vadd.f32 %v757_v61, %v753_v58 }
  0xd7   : > { %v758_v4 = vadd.f32 %v734_v63, %v733_v62 }
  0xd8   : > { %763 = vst [vmem:[#allocation3] sm:$0xff] %v759_v1  ;;  %764 = vst [vmem:[#allocation3 + $0x8] sm:$0xff] %v760_v2 }
  0xd9   : > { %765 = vst [vmem:[#allocation3 + $0x10] sm:$0xff] %v761_v3  ;;  %v762_v5 = vadd.f32 %v758_v4, %v754_v0 }
  0xdb   : > { %766 = vst [vmem:[#allocation3 + $0x18] sm:$0xff] %v762_v5 }
  0xdc PF: > { %v770_v6 = vld [vmem:[#allocation2] sm:$0xff]  ;;  %v771_v7 = vld [vmem:[#allocation2 + $0x8] sm:$0xff]  ;;  %vm802_vm6 = vcmask 1041409   ;;  %vm804_vm7 = vcmask 1042434   ;;  %vm806_vm8 = vcmask 1043459   ;;  %s1141_s24 = sshll.u32 %s1572_s17, 6 }
  0xdd   : > { %v772_v8 = vld [vmem:[#allocation2 + $0x10] sm:$0xff]  ;;  %v773_v17 = vld [vmem:[#allocation2 + $0x18] sm:$0xff]  ;;  %v774_v18 = vrot.slane %v770_v6, 4  ;;  %v780_v19 = vrot.slane %v771_v7, 4  ;;  %s866_s11 = sshll.u32 %s1948_s8, 4  ;;  %s879_s10 = sshll.u32 %s1952_s21, 4  ;;  %s2075_s11 = int_to_ptr.vmem [resolvable:$true] %s866_s11  ;;  %s2084_s10 = int_to_ptr.vmem [resolvable:$true] %s879_s10 }
  0xde   : > { %v786_v20 = vrot.slane %v772_v8, 4  ;;  %v792_v23 = vrot.slane %v773_v17, 4  ;;  %s2071_s17 = scalar_lea.hbm %s2164_s2, %s1141_s24  ;;  %s2082_s27 = scalar_lea.hbm %s2165_s3, %s1141_s24 }
  0xdf   : > { %v810_v21 = vld [vmem:[#allocation3] sm:$0xff]  ;;  %v811_v22 = vld [vmem:[#allocation3 + $0x8] sm:$0xff]  ;;  %v775_v28 = vadd.f32 %v774_v18, %v770_v6  ;;  %v781_v29 = vadd.f32 %v780_v19, %v771_v7  ;;  %s848_s28 = scalar_lea.sflag [#allocation7], %s1901_s20  ;;  %s1390_s15 = scalar_lea.vmem %s2075_s11, 64 }
  0xe0   : > { %v812_v24 = vld [vmem:[#allocation3 + $0x10] sm:$0xff]  ;;  %v814_v26 = vrot.slane %v810_v21, 4  ;;  %v820_v27 = vrot.slane %v811_v22, 4  ;;  %v787_v30 = vadd.f32 %v786_v20, %v772_v8  ;;  %v793_v32 = vadd.f32 %v792_v23, %v773_v17  ;;  %p1391_p1 = scmp.ne.s32.totalorder %s2075_s11, %s1390_s15  ;;  %s1647_s9 = smov [#allocation6]  }
  0xe1   : > { %v826_v31 = vrot.slane %v812_v24, 4  ;;  %v776_v41 = vrot.slane %v775_v28, 2  ;;  %v782_v42 = vrot.slane %v781_v29, 2  ;;  %s1394_s7 = sshll.u32 %s1647_s9, 4  ;;  %s1395_s7 = int_to_ptr.vmem [resolvable:$false] %s1394_s7 }
  0xe2   : > { %v813_v25 = vld [vmem:[#allocation3 + $0x18] sm:$0xff]  ;;  %v815_v33 = vadd.f32 %v814_v26, %v810_v21  ;;  %v821_v36 = vadd.f32 %v820_v27, %v811_v22  ;;  %v788_v9 = vrot.slane %v787_v30, 2  ;;  %v794_v45 = vrot.slane %v793_v32, 2  ;;  %p1392_p2 = pnand %p1391_p1, %p1742_p11  ;;  %s1396_s29 = scalar_lea.vmem %s1395_s7, 128 }
  0xe3   : > { %v832_v40 = vrot.slane %v813_v25, 4  ;;  %v827_v10 = vadd.f32 %v826_v31, %v812_v24  ;;  %v777_v11 = vadd.f32 %v776_v41, %v775_v28  ;;  %v783_v12 = vadd.f32 %v782_v42, %v781_v29  ;;  %p1397_p4 = scmp.lt.s32.totalorder %s2075_s11, %s1395_s7  ;;  %p1398_p6 = scmp.lt.s32.totalorder %s1396_s29, %s1390_s15 }
  0xe4   : > { %v816_v46 = vrot.slane %v815_v33, 2  ;;  %v822_v47 = vrot.slane %v821_v36, 2  ;;  %v789_v13 = vadd.f32 %v788_v9, %v787_v30  ;;  %v795_v15 = vadd.f32 %v794_v45, %v793_v32  ;;  %p1393_p3 = pneg %p1392_p2 }
  0xe5   : > { %v833_v49 = vadd.f32 %v832_v40, %v813_v25  ;;  %v828_v14 = vrot.slane %v827_v10, 2  ;;  %v778_v37 = vrot.slane %v777_v11, 1  ;;  %v784_v38 = vrot.slane %v783_v12, 1  ;;  %p1399_p7 = por %p1398_p6, %p1397_p4 }
  0xe6   : > { %v817_v16 = vadd.f32 %v816_v46, %v815_v33  ;;  %v823_v34 = vadd.f32 %v822_v47, %v821_v36  ;;  %v790_v39 = vrot.slane %v789_v13, 1  ;;  %v796_v44 = vrot.slane %v795_v15, 1 }
  0xe7   : > { %v834_v35 = vrot.slane %v833_v49, 2  ;;  %v829_v43 = vadd.f32 %v828_v14, %v827_v10  ;;  %v779_v52 = vadd.f32 %v778_v37, %v777_v11  ;;  %v785_v53 = vadd.f32 %v784_v38, %v783_v12  ;;  %p1400_p8 = pnand %p1399_p7, %p1393_p3 }
  0xe8   : > { %v818_v48 = vrot.slane %v817_v16, 1  ;;  %v824_v50 = vrot.slane %v823_v34, 1  ;;  %v791_v54 = vadd.f32 %v790_v39, %v789_v13  ;;  %v797_v56 = vadd.f32 %v796_v44, %v795_v15 }
  0xe9   : > { %v835_v51 = vadd.f32 %v834_v35, %v833_v49  ;;  %v830_v55 = vrot.slane %v829_v43, 1  ;;  %v803_v60 = vsel %vm802_vm6, %v785_v53, %v779_v52 }
  0xea   : > { %v819_v57 = vadd.f32 %v818_v48, %v817_v16  ;;  %v825_v58 = vadd.f32 %v824_v50, %v823_v34  ;;  %v805_v62 = vsel %vm804_vm7, %v791_v54, %v803_v60 }
  0xeb   : > { %v836_v59 = vrot.slane %v835_v51, 1  ;;  %v831_v61 = vadd.f32 %v830_v55, %v829_v43  ;;  %v807_v1 = vsel %vm806_vm8, %v797_v56, %v805_v62 }
  0xec   : > { %v842_v0 = vsel %vm802_vm6, %v825_v58, %v819_v57  ;;  %809 = vst [vmem:[%s1948_s8] sm:$0xf] %v807_v1 }
  0xed   : > { %v837_v63 = vadd.f32 %v836_v59, %v835_v51  ;;  %v843_v2 = vsel %vm804_vm7, %v831_v61, %v842_v0 }
  0xef   : > { %v844_v3 = vsel %vm806_vm8, %v837_v63, %v843_v2 }
  0xf0   : > { %846 = vst [vmem:[%s1952_s21] sm:$0xf] %v844_v3 }
  0xf1   : > { %1403 = shalt.err (!%p1400_p8)
}
  0xf2   : > { %s1404_s8 = scalar_lea.hbm %s2071_s17, 64  ;;  %s1408_s25 = scalar_lea.hbm %s2164_s2, 128 }
  0xf3   : > { %p1405_p9 = scmp.ne.s32.totalorder %s2071_s17, %s1404_s8  ;;  %p1409_p12 = scmp.lt.u32.totalorder %s2071_s17, %s2164_s2 }
  0xf4   : > { %p1410_p1 = scmp.lt.u32.totalorder %s1408_s25, %s1404_s8  ;;  %p1412_p3 = scmp.lt.u32.totalorder %s1404_s8, %s2071_s17 }
  0xf5   : > { %p1406_p10 = pnand %p1405_p9, %p1742_p11 }
  0xf6   : > { %p1411_p2 = por %p1410_p1, %p1409_p12 }
  0xf7   : > { %p1407_p5 = pneg %p1406_p10 }
  0xf8   : > { %p1413_p4 = por %p1412_p3, %p1411_p2 }
  0xfa   : > { %p1414_p6 = pnand %p1413_p4, %p1407_p5 }
  0xfc   : > { %1417 = shalt.err (!%p1414_p6)
}
  0xfd   : > { %1153 = dma.vmem_to_hbm [thread:$0]  (%p1742_p11), %s2075_s11, 64, %s2071_s17, %s848_s28  }
  0xfe   : > { %s853_s23 = scalar_lea.sflag [#allocation9], %s1901_s20  ;;  %s1418_s15 = scalar_lea.vmem %s2084_s10, 64 }
  0xff   : > { %p1419_p7 = scmp.ne.s32.totalorder %s2084_s10, %s1418_s15  ;;  %s1648_s9 = smov [#allocation8]  }
 0x100   : > { %s1422_s7 = sshll.u32 %s1648_s9, 4  ;;  %s1423_s7 = int_to_ptr.vmem [resolvable:$false] %s1422_s7 }
 0x101   : > { %p1420_p8 = pnand %p1419_p7, %p1742_p11  ;;  %s1424_s29 = scalar_lea.vmem %s1423_s7, 128 }
 0x102   : > { %p1425_p10 = scmp.lt.s32.totalorder %s2084_s10, %s1423_s7  ;;  %p1426_p5 = scmp.lt.s32.totalorder %s1424_s29, %s1418_s15 }
 0x103   : > { %p1421_p9 = pneg %p1420_p8 }
 0x104   : > { %p1427_p12 = por %p1426_p5, %p1425_p10 }
 0x106   : > { %p1428_p1 = pnand %p1427_p12, %p1421_p9 }
 0x108   : > { %1431 = shalt.err (!%p1428_p1)
}
 0x109   : > { %s1432_s20 = scalar_lea.hbm %s2082_s27, 64  ;;  %s1436_s28 = scalar_lea.hbm %s2165_s3, 128 }
 0x10a   : > { %p1433_p2 = scmp.ne.s32.totalorder %s2082_s27, %s1432_s20  ;;  %p1437_p6 = scmp.lt.u32.totalorder %s2082_s27, %s2165_s3 }
 0x10b   : > { %p1438_p7 = scmp.lt.u32.totalorder %s1436_s28, %s1432_s20  ;;  %p1440_p9 = scmp.lt.u32.totalorder %s1432_s20, %s2082_s27 }
 0x10c   : > { %p1434_p3 = pnand %p1433_p2, %p1742_p11 }
 0x10d   : > { %p1439_p8 = por %p1438_p7, %p1437_p6 }
 0x10e   : > { %p1435_p4 = pneg %p1434_p3 }
 0x10f   : > { %p1441_p10 = por %p1440_p9, %p1439_p8 }
 0x111   : > { %p1442_p5 = pnand %p1441_p10, %p1435_p4 }
 0x113   : > { %1445 = shalt.err (!%p1442_p5)
}
 0x114   : > { %1154 = dma.vmem_to_hbm [thread:$0]  (%p1742_p11), %s2084_s10, 64, %s2082_s27, %s853_s23  }
 0x115 PF: > { %s891_s24 = sand.u32 1, %s1552_s12   ;;  %p1158_p12 = pnand %p1101_p0, %p1746_p13 }
 0x116   : > { %s892_s25 = scalar_lea.sflag [#allocation7], %s891_s24 }
 0x117   : > { %1543 = dma.done.wait (!%p1158_p12), %s892_s25, 64  }
 0x118   : > { %1545 = vsyncadd (!%p1158_p12), %s892_s25, 4294967232  ;;  %s901_s0 = scalar_lea.sflag [#allocation9], %s891_s24 }
 0x119   : > { %1547 = dma.done.wait (!%p1158_p12), %s901_s0, 64  }
 0x11a   : > { %1549 = vsyncadd (!%p1158_p12), %s901_s0, 4294967232  ;;  %s20_s19 = sadd.s32 1, %s1580_s19   ;;  %s2186_s12 = smov %s1556_s13 }
 0x11b   : > { %p17_p1 = scmp.ge.s32.totalorder %s20_s19, 4   ;;  %s2187_s13 = smov %s1560_s14 }
 0x11c   : > { %s2188_s14 = smov %s1737_s30  ;;  %s2189_s15 = smov %s1568_s16 }
 0x11d   : > { %s2190_s16 = smov %s1740_s4  ;;  %s2191_s17 = smov %s1576_s18 }
 0x11e   : > { %s2192_s18 = smov %s2194_s22  ;;  %19 = sbr.rel (!%p17_p1) target bundleno = 9 (0x9), region = 273 }
 0x125   :  { %906 = vsyncpa [#allocation7], 1 }
 0x126   :  { %908 = vsyncpa [#allocation7 + $0x1], 1 }
 0x127   :  { %909 = vsyncpa [#allocation9], 1 }
 0x128   :  { %911 = vsyncpa [#allocation9 + $0x1], 1 }

</bundles_post_ra>
